<compile_context>
chip_gen: v7x
topology: tpu7x:2x2x1
jax: 0.10.0
libtpu: 0.0.40
codegen_flags: <defaults>
</compile_context>

<pallas_src>
import jax
import jax.numpy as jnp
from jax.experimental import pallas as pl
from jax.experimental.pallas import tpu as pltpu

K_IN = 500       # flattened input features of the module
N_OUT = 2        # module output features
SPLIT_MIN = 4096  # minimum batch worth splitting in two blocks for v7x megacore


def fedinet_fused_kernel(x_ref, w_ref, b_ref, o_ref):
    # out = x @ W_folded + b_folded   (f32 accumulation on the MXU)
    o_ref[...] = (
        jnp.dot(x_ref[...], w_ref[...], preferred_element_type=jnp.float32)
        + b_ref[...]
    ).astype(o_ref.dtype)


def _fold_params(params):
    """Collapse the three activation-free Linears into one affine map."""
    w1, b1, w2, b2, w3, b3 = params
    hp = jax.lax.Precision.HIGHEST
    w23 = jnp.dot(w2, w3, precision=hp)                      # (256, 2)
    w = jnp.dot(w1, w23, precision=hp)                       # (500, 2)
    b = (jnp.dot(b1, w23, precision=hp)
         + jnp.dot(b2, w3, precision=hp)
         + b3)                                               # (1, 2)
    return w, b


def _tb_max():
    """Largest batch tile that fits the default scoped VMEM per generation."""
    try:
        kind = jax.devices()[0].device_kind.lower()
    except Exception:
        kind = ""
    if ("v6" in kind) or ("v7" in kind):
        return 4096   # 2 x (4096x500 f32) ~= 16 MiB, inside 32 MiB default
    return 2048       # v5e default scoped VMEM is 16 MiB -> stay at ~8 MiB


def fedinet_forward(x, params, tb=None):
    B = x.shape[0]
    x2d = x.reshape(B, -1).astype(jnp.float32)           # x.view(x.size(0), -1)
    assert x2d.shape[1] == K_IN, f"expected {K_IN} features, got {x2d.shape[1]}"

    w, b = _fold_params(params)                           # (500, 2), (1, 2)

    # Batch tile selection (no padding of x anywhere):
    #  * B > TB_MAX: fixed TB_MAX tiles, ragged last block masked by Pallas.
    #  * SPLIT_MIN <= B <= TB_MAX: split in ~2 blocks so both v7x TCs run.
    #  * small B: single full-array block (block dim == array dim is legal).
    tb_max = _tb_max()
    if tb is not None:
        TB = min(tb, B)
    elif B > tb_max:
        TB = tb_max
    elif B >= SPLIT_MIN:
        TB = ((-(-B // 2)) + 7) // 8 * 8                   # ~B/2, multiple of 8
    else:
        TB = B

    grid = (pl.cdiv(B, TB),)
    flops = 2 * B * K_IN * N_OUT
    bytes_accessed = (B * K_IN + w.size + b.size + B * N_OUT) * 4

    out = pl.pallas_call(
        fedinet_fused_kernel,
        out_shape=jax.ShapeDtypeStruct((B, N_OUT), jnp.float32),
        grid=grid,
        in_specs=[
            pl.BlockSpec((TB, K_IN), lambda i: (i, 0)),     # x tile, pipelined
            pl.BlockSpec((K_IN, N_OUT), lambda i: (0, 0)),  # folded W, resident
            pl.BlockSpec((1, N_OUT), lambda i: (0, 0)),     # folded b, resident
        ],
        out_specs=pl.BlockSpec((TB, N_OUT), lambda i: (i, 0)),
        compiler_params=pltpu.CompilerParams(
            dimension_semantics=("parallel",),   # shard batch over v7x's 2 TCs
        ),
        cost_estimate=pl.CostEstimate(
            flops=flops, transcendentals=0, bytes_accessed=bytes_accessed),
    )(x2d, w, b)

    return out


def init_params(key):
    # Synthetic init mirroring Linear(500,256), Linear(256,32), Linear(32,2),
    # stored as (in, out) for the x @ W convention; biases as (1, out).
    ks = jax.random.split(key, 6)

    def lin(kw, kb, fan_in, fan_out):
        bound = 1.0 / jnp.sqrt(fan_in)
        w = jax.random.uniform(kw, (fan_in, fan_out), jnp.float32, -bound, bound)
        b = jax.random.uniform(kb, (1, fan_out), jnp.float32, -bound, bound)
        return w, b

    w1, b1 = lin(ks[0], ks[1], 500, 256)
    w2, b2 = lin(ks[2], ks[3], 256, 32)
    w3, b3 = lin(ks[4], ks[5], 32, 2)
    return (w1, b1, w2, b2, w3, b3)


def reference_forward(x, params):
    # Faithful 3-layer reference (high-precision f32 matmuls).
    w1, b1, w2, b2, w3, b3 = params
    hp = jax.lax.Precision.HIGHEST
    x2d = x.reshape(x.shape[0], -1)
    h1 = jnp.dot(x2d, w1, precision=hp) + b1
    h2 = jnp.dot(h1, w2, precision=hp) + b2
    return jnp.dot(h2, w3, precision=hp) + b3


if __name__ == "__main__":
    key = jax.random.PRNGKey(0)
    k_x, k_p = jax.random.split(key)
    params = init_params(k_p)

    # Small-shape check (batch=2, 500 flattened features); single full block.
    x = jax.random.normal(k_x, (2, 500), jnp.float32)
    out = jax.block_until_ready(fedinet_forward(x, params))
    ref = reference_forward(x, params)
    assert out.shape == (2, 2)
    assert jnp.allclose(out, ref, atol=1e-3, rtol=1e-3), "mismatch vs reference (B=2)"

    # Exercise the tiled path with a ragged (masked) last batch block.
    x_big = jax.random.normal(jax.random.PRNGKey(1), (1031, 500), jnp.float32)
    out_big = jax.block_until_ready(fedinet_forward(x_big, params, tb=256))
    ref_big = reference_forward(x_big, params)
    assert out_big.shape == (1031, 2)
    assert jnp.allclose(out_big, ref_big, atol=1e-3, rtol=1e-3), "mismatch (B=1031)"

    # Also run the default (auto TB) tiling on the same batch.
    out_auto = jax.block_until_ready(fedinet_forward(x_big, params))
    assert jnp.allclose(out_auto, ref_big, atol=1e-3, rtol=1e-3), "mismatch (auto TB)"

    print("KERNEL_OK")
</pallas_src>

<mosaic_0001>
module attributes {stable_mosaic.version = 11 : i64} {
  func.func @fedinet_fused_kernel(%arg0: i32, %arg1: memref<2x500xf32, #tpu.memory_space<vmem>>, %arg2: memref<500x2xf32, #tpu.memory_space<vmem>>, %arg3: memref<1x2xf32, #tpu.memory_space<vmem>>, %arg4: memref<2x2xf32, #tpu.memory_space<vmem>>) attributes {dimension_semantics = [#tpu.dimension_semantics<parallel>], iteration_bounds = array<i64: 1>, scalar_prefetch = 0 : i64, scratch_operands = 0 : i64, tpu.core_type = #tpu.core_type<tc>, window_params = [{transform_indices = @transform_0, window_bounds = array<i64: 2, 500>}, {pipeline_mode = #tpu.pipeline_mode<synchronous>, transform_indices = @transform_1, window_bounds = array<i64: 500, 2>}, {pipeline_mode = #tpu.pipeline_mode<synchronous>, transform_indices = @transform_2, window_bounds = array<i64: 1, 2>}, {transform_indices = @transform_3, window_bounds = array<i64: 2, 2>}]} {
    %c0 = arith.constant 0 : index
    %c0_0 = arith.constant 0 : index
    %0 = vector.load %arg1[%c0, %c0_0] : memref<2x500xf32, #tpu.memory_space<vmem>>, vector<2x500xf32>
    %c0_1 = arith.constant 0 : index
    %c0_2 = arith.constant 0 : index
    %1 = vector.load %arg2[%c0_1, %c0_2] : memref<500x2xf32, #tpu.memory_space<vmem>>, vector<500x2xf32>
    %cst = arith.constant dense<0.000000e+00> : vector<2x2xf32>
    %2 = tpu.matmul %0, %1, %cst {dimension_numbers = #tpu.dot_dimension_numbers<[1], [0], [0], [1], [0, 0, 1, 1], [], []>} : vector<2x500xf32>, vector<500x2xf32>, vector<2x2xf32> -> vector<2x2xf32>
    %c0_3 = arith.constant 0 : index
    %c0_4 = arith.constant 0 : index
    %3 = vector.load %arg3[%c0_3, %c0_4] : memref<1x2xf32, #tpu.memory_space<vmem>>, vector<1x2xf32>
    %4 = vector.broadcast %3 : vector<1x2xf32> to vector<2x2xf32>
    %5 = arith.addf %2, %4 : vector<2x2xf32>
    %c0_5 = arith.constant 0 : index
    %c0_6 = arith.constant 0 : index
    %6 = vector.load %arg4[%c0_5, %c0_6] : memref<2x2xf32, #tpu.memory_space<vmem>>, vector<2x2xf32>
    tpu.vector_store %arg4[%c0_5, %c0_6], %5 {strides = array<i32>} : memref<2x2xf32, #tpu.memory_space<vmem>>, vector<2x2xf32>,
    return
  }
  func.func @transform_0(%arg0: i32) -> (i32, i32) {
    %c0_i32 = arith.constant 0 : i32
    %c0_i32_0 = arith.constant 0 : i32
    return %arg0, %c0_i32 : i32, i32
  }
  func.func @transform_1(%arg0: i32) -> (i32, i32) {
    %c0_i32 = arith.constant 0 : i32
    %c0_i32_0 = arith.constant 0 : i32
    %c0_i32_1 = arith.constant 0 : i32
    return %c0_i32, %c0_i32_0 : i32, i32
  }
  func.func @transform_2(%arg0: i32) -> (i32, i32) {
    %c0_i32 = arith.constant 0 : i32
    %c0_i32_0 = arith.constant 0 : i32
    %c0_i32_1 = arith.constant 0 : i32
    return %c0_i32, %c0_i32_0 : i32, i32
  }
  func.func @transform_3(%arg0: i32) -> (i32, i32) {
    %c0_i32 = arith.constant 0 : i32
    %c0_i32_0 = arith.constant 0 : i32
    return %arg0, %c0_i32 : i32, i32
  }
}

</mosaic_0001>

<bundles_post_ra>
// kernel: tpu_custom_call.1
= control target key start
LH: loop header
LB: loop body
LE: loop exit
PB: predicated region body
PF: predicated region fallthrough
CT: control target
= control target key end

     0   :  { %v414_v3 = vmov 0.0|0.0   ;;  %v415_v29 = vmov 1983009808   ;;  %v91_v31 = vlaneseq  ;;  %s665_s0 = inlined_call_operand.vmem [shape: f32[2,500], index: 0, kind: input, shape index: {}]   ;;  %s666_s1 = inlined_call_operand.vmem [shape: f32[500,2], index: 1, kind: input, shape index: {}]   ;;  %s667_s2 = inlined_call_operand.vmem [shape: f32[1,2], index: 2, kind: input, shape index: {}]   ;;  %s668_s3 = inlined_call_operand.hbm [shape: f32[2,2], index: 3, kind: output, shape index: {}]  }
   0x1   :  { %v48_v0 = vld [vmem:[%s666_s1 + $0x100] sm:$0xff]  ;;  %v49_v1 = vld [vmem:[%s666_s1 + $0x108] sm:$0xff]  ;;  %v50_v2 = vld [vmem:[%s666_s1 + $0x110] sm:$0xff]  ;;  %340 = vmatprep.subr.bf16.mxu1 %v414_v3  ;;  %v89_v30 = vunpack.c.l.s4 %v415_v29 }
   0x2   :  { %v341_v4 = vpack.c.bf16 %v49_v1, %v48_v0  ;;  %v51_v5 = vld [vmem:[%s666_s1 + $0x118] sm:$0xff]  ;;  %v52_v7 = vld [vmem:[%s666_s1 + $0x120] sm:$0xff]  ;;  %v53_v8 = vld [vmem:[%s666_s1 + $0x128] sm:$0xff]  ;;  %v92_v42 = vshrl.u32 %v91_v31, 7 }
   0x3   :  { %v344_v6 = vpack.c.bf16 %v51_v5, %v50_v2  ;;  %v32_v9 = vld [vmem:[%s666_s1 + $0x80] sm:$0xff]  ;;  %v33_v10 = vld [vmem:[%s666_s1 + $0x88] sm:$0xff]  ;;  %v34_v15 = vld [vmem:[%s666_s1 + $0x90] sm:$0xff]  ;;  %v347_v18 = vpack.c.bf16 %v53_v8, %v52_v7  ;;  %v90_v41 = vunpack.c.0.s8 %v89_v30 }
   0x4   :  { %342 = vmatpush1.bf16.msra.mxu1 %v341_v4  ;;  %v16_v11 = vld [vmem:[%s666_s1] sm:$0xff]  ;;  %v308_v12 = vpack.c.bf16 %v33_v10, %v32_v9  ;;  %v17_v13 = vld [vmem:[%s666_s1 + $0x8] sm:$0xff]  ;;  %v35_v16 = vld [vmem:[%s666_s1 + $0x98] sm:$0xff] }
   0x5   :  { %343 = vmatprep.subr.bf16.mxu1 %v414_v3  ;;  %v310_v14 = vpack.c.bf16 %v17_v13, %v16_v11  ;;  %v18_v17 = vld [vmem:[%s666_s1 + $0x10] sm:$0xff]  ;;  %v312_v20 = vpack.c.bf16 %v35_v16, %v34_v15  ;;  %v19_v21 = vld [vmem:[%s666_s1 + $0x18] sm:$0xff]  ;;  %v36_v24 = vld [vmem:[%s666_s1 + $0xa0] sm:$0xff]  ;;  %v93_v52 = vsub.s32 %v90_v41, %v92_v42 }
   0x6   :  { %v54_v19 = vld [vmem:[%s666_s1 + $0x130] sm:$0xff]  ;;  %309 = vmatprep.subr.bf16.mxu0 %v308_v12  ;;  %v55_v22 = vld [vmem:[%s666_s1 + $0x138] sm:$0xff]  ;;  %v314_v23 = vpack.c.bf16 %v19_v21, %v18_v17  ;;  %v37_v25 = vld [vmem:[%s666_s1 + $0xa8] sm:$0xff] }
   0x7   :  { %311 = vmatpush3.bf16.msra.mxu0 %v310_v14  ;;  %v316_v26 = vpack.c.bf16 %v37_v25, %v36_v24  ;;  %v20_v27 = vld [vmem:[%s666_s1 + $0x20] sm:$0xff]  ;;  %v21_v28 = vld [vmem:[%s666_s1 + $0x28] sm:$0xff]  ;;  %v38_v32 = vld [vmem:[%s666_s1 + $0xb0] sm:$0xff]  ;;  %v350_v34 = vpack.c.bf16 %v55_v22, %v54_v19 }
   0x8   :  { %345 = vmatpush1.bf16.msra.mxu1 %v344_v6  ;;  %313 = vmatprep.subr.bf16.mxu0 %v312_v20  ;;  %v39_v33 = vld [vmem:[%s666_s1 + $0xb8] sm:$0xff]  ;;  %v56_v35 = vld [vmem:[%s666_s1 + $0x140] sm:$0xff]  ;;  %v57_v36 = vld [vmem:[%s666_s1 + $0x148] sm:$0xff]  ;;  %v318_v37 = vpack.c.bf16 %v21_v28, %v20_v27 }
   0x9   :  { %346 = vmatprep.subr.bf16.mxu1 %v414_v3  ;;  %v320_v38 = vpack.c.bf16 %v39_v33, %v38_v32  ;;  %v22_v39 = vld [vmem:[%s666_s1 + $0x30] sm:$0xff]  ;;  %v23_v40 = vld [vmem:[%s666_s1 + $0x38] sm:$0xff]  ;;  %v40_v43 = vld [vmem:[%s666_s1 + $0xc0] sm:$0xff]  ;;  %v353_v45 = vpack.c.bf16 %v57_v36, %v56_v35 }
   0xa   :  { %v41_v44 = vld [vmem:[%s666_s1 + $0xc8] sm:$0xff]  ;;  %v58_v46 = vld [vmem:[%s666_s1 + $0x150] sm:$0xff]  ;;  %v59_v47 = vld [vmem:[%s666_s1 + $0x158] sm:$0xff]  ;;  %v322_v48 = vpack.c.bf16 %v23_v40, %v22_v39 }
   0xb   :  { %315 = vmatpush3.bf16.msra.mxu0 %v314_v23  ;;  %v324_v49 = vpack.c.bf16 %v41_v44, %v40_v43  ;;  %v24_v50 = vld [vmem:[%s666_s1 + $0x40] sm:$0xff]  ;;  %v25_v51 = vld [vmem:[%s666_s1 + $0x48] sm:$0xff]  ;;  %v42_v53 = vld [vmem:[%s666_s1 + $0xd0] sm:$0xff]  ;;  %v356_v55 = vpack.c.bf16 %v59_v47, %v58_v46 }
   0xc   :  { %348 = vmatpush1.bf16.msra.mxu1 %v347_v18  ;;  %317 = vmatprep.subr.bf16.mxu0 %v316_v26  ;;  %v43_v54 = vld [vmem:[%s666_s1 + $0xd8] sm:$0xff]  ;;  %v60_v56 = vld [vmem:[%s666_s1 + $0x160] sm:$0xff]  ;;  %v61_v57 = vld [vmem:[%s666_s1 + $0x168] sm:$0xff]  ;;  %v326_v58 = vpack.c.bf16 %v25_v51, %v24_v50 }
   0xd   :  { %349 = vmatprep.subr.bf16.mxu1 %v414_v3  ;;  %v15_v59 = vld [vmem:[%s665_s0] sm:$0xff]  ;;  %v328_v60 = vpack.c.bf16 %v43_v54, %v42_v53  ;;  %v26_v61 = vld [vmem:[%s666_s1 + $0x50] sm:$0xff]  ;;  %v27_v62 = vld [vmem:[%s666_s1 + $0x58] sm:$0xff] }
   0xe   :  { %v87_v63 = vcombine.high %v15_v59, %v15_v59  ;;  %v94_v0 = vrot.slane %v15_v59, %v93_v52 }
   0xf   :  { %319 = vmatpush3.bf16.msra.mxu0 %v318_v37 }
  0x10   :  { %351 = vmatpush1.bf16.msra.mxu1 %v350_v34  ;;  %321 = vmatprep.subr.bf16.mxu0 %v320_v38 }
  0x11   :  { %352 = vmatprep.subr.bf16.mxu1 %v414_v3 }
  0x13   :  { %323 = vmatpush3.bf16.msra.mxu0 %v322_v48 }
  0x14   :  { %354 = vmatpush1.bf16.msra.mxu1 %v353_v45  ;;  %325 = vmatprep.subr.bf16.mxu0 %v324_v49 }
  0x15   :  { %355 = vmatprep.subr.bf16.mxu1 %v414_v3 }
  0x16   :  { %8 = vsyncpa [#allocation3], 0  ;;  %v44_v1 = vld [vmem:[%s666_s1 + $0xe0] sm:$0xff]  ;;  %v45_v2 = vld [vmem:[%s666_s1 + $0xe8] sm:$0xff]  ;;  %v359_v4 = vpack.c.bf16 %v61_v57, %v60_v56  ;;  %v102_v5 = vcombine.high %v94_v0, %v94_v0  ;;  %v567_v6 = vrot.slane %v87_v63, %v93_v52  ;;  %v330_v9 = vpack.c.bf16 %v27_v62, %v26_v61  ;;  %s417_s5 = smov [#allocation2]  }
  0x17   :  { %v62_v7 = vld [vmem:[%s666_s1 + $0x170] sm:$0xff]  ;;  %v63_v8 = vld [vmem:[%s666_s1 + $0x178] sm:$0xff]  ;;  %327 = vmatpush3.bf16.msra.mxu0 %v326_v58  ;;  %vm107_vm0 = vcmask 949248   ;;  %v332_v10 = vpack.c.bf16 %v45_v2, %v44_v1  ;;  %v28_v11 = vld [vmem:[%s666_s1 + $0x60] sm:$0xff]  ;;  %v416_v43 = vmov 0.0   ;;  %vm110_vm1 = vcmask 1043456  }
  0x18   :  { %357 = vmatpush1.bf16.msra.mxu1 %v356_v55  ;;  %329 = vmatprep.subr.bf16.mxu0 %v328_v60  ;;  %v29_v12 = vld [vmem:[%s666_s1 + $0x68] sm:$0xff]  ;;  %v103_v13 = vcombine.high %v567_v6, %v567_v6  ;;  %v46_v14 = vld [vmem:[%s666_s1 + $0xf0] sm:$0xff]  ;;  %v47_v15 = vld [vmem:[%s666_s1 + $0xf8] sm:$0xff]  ;;  %v362_v16 = vpack.c.bf16 %v63_v8, %v62_v7  ;;  %s262_s6 = sshll.u32 %s417_s5, 4  ;;  %vm254_vm2 = vcmask 9216   ;;  %s263_s6 = int_to_ptr.vmem [resolvable:$true] %s262_s6 }
  0x19   :  { %358 = vmatprep.subr.bf16.mxu1 %v414_v3  ;;  %178 = vmatprep.mubr.f32.mxu0 %v102_v5  ;;  %v64_v17 = vld [vmem:[%s666_s1 + $0x180] sm:$0xff]  ;;  %v65_v18 = vld [vmem:[%s666_s1 + $0x188] sm:$0xff]  ;;  %v334_v19 = vpack.c.bf16 %v29_v12, %v28_v11  ;;  %v336_v20 = vpack.c.bf16 %v47_v15, %v46_v14  ;;  %v30_v21 = vld [vmem:[%s666_s1 + $0x70] sm:$0xff]  ;;  %p395_p1 = scmp.lt.s32.totalorder %s263_s6, %s263_s6 }
  0x1a   :  { %272 = vmatprep.mubr.msk.f32.mxu1 %vm107_vm0, %v103_v13  ;;  %v31_v22 = vld [vmem:[%s666_s1 + $0x78] sm:$0xff]  ;;  %v365_v23 = vpack.c.bf16 %v65_v18, %v64_v17  ;;  %v66_v24 = vld [vmem:[%s666_s1 + $0x190] sm:$0xff]  ;;  %v68_v28 = vld [vmem:[%s666_s1 + $0x1a0] sm:$0xff] }
  0x1b   :  { %331 = vmatpush3.bf16.msra.mxu0 %v330_v9  ;;  %v67_v25 = vld [vmem:[%s666_s1 + $0x198] sm:$0xff]  ;;  %v338_v26 = vpack.c.bf16 %v31_v22, %v30_v21  ;;  %v69_v29 = vld [vmem:[%s666_s1 + $0x1a8] sm:$0xff]  ;;  %v70_v31 = vld [vmem:[%s666_s1 + $0x1b0] sm:$0xff] }
  0x1c   :  { %360 = vmatpush1.bf16.msra.mxu1 %v359_v4  ;;  %333 = vmatprep.subr.bf16.mxu0 %v332_v10  ;;  %v368_v27 = vpack.c.bf16 %v67_v25, %v66_v24  ;;  %v371_v30 = vpack.c.bf16 %v69_v29, %v68_v28  ;;  %v71_v32 = vld [vmem:[%s666_s1 + $0x1b8] sm:$0xff]  ;;  %v72_v34 = vld [vmem:[%s666_s1 + $0x1c0] sm:$0xff]  ;;  %v73_v35 = vld [vmem:[%s666_s1 + $0x1c8] sm:$0xff] }
  0x1d   :  { %361 = vmatprep.subr.bf16.mxu1 %v414_v3  ;;  %v374_v33 = vpack.c.bf16 %v71_v32, %v70_v31  ;;  %v377_v36 = vpack.c.bf16 %v73_v35, %v72_v34  ;;  %v74_v37 = vld [vmem:[%s666_s1 + $0x1d0] sm:$0xff]  ;;  %v75_v38 = vld [vmem:[%s666_s1 + $0x1d8] sm:$0xff]  ;;  %v76_v40 = vld [vmem:[%s666_s1 + $0x1e0] sm:$0xff] }
  0x1e   :  { %v380_v39 = vpack.c.bf16 %v75_v38, %v74_v37  ;;  %v77_v41 = vld [vmem:[%s666_s1 + $0x1e8] sm:$0xff]  ;;  %v78_v44 = vld [vmem:[%s666_s1 + $0x1f0] sm:$0xf]  ;;  %v270_v48 = vld [vmem:[%s667_s2] ss:$0 sm:$0xff]  ;;  %s390_s1 = scalar_lea.vmem %s263_s6, 32 }
  0x1f   :  { %335 = vmatpush3.bf16.msra.mxu0 %v334_v19  ;;  %v383_v42 = vpack.c.bf16 %v77_v41, %v76_v40  ;;  %p391_p0 = scmp.ne.s32.totalorder %s263_s6, %s390_s1  ;;  %p396_p2 = scmp.lt.s32.totalorder %s390_s1, %s390_s1 }
  0x20   :  { %363 = vmatpush1.bf16.msra.mxu1 %v362_v16  ;;  %337 = vmatprep.subr.bf16.mxu0 %v336_v20 }
  0x21   :  { %364 = vmatprep.subr.bf16.mxu1 %v414_v3  ;;  %p397_p3 = por %p396_p2, %p395_p1 }
  0x23   :  { %339 = vmatpush3.bf16.msra.mxu0 %v338_v26  ;;  %p398_p4 = pnand %p397_p3, %p391_p0 }
  0x24   :  { %366 = vmatpush1.bf16.msra.mxu1 %v365_v23 }
  0x25   :  { %367 = vmatprep.subr.bf16.mxu1 %v414_v3 }
  0x26   :  { %179 = vmatmul.mubr.f32.vlgmr.msra.gmra.mrb[0].mxu0 %v94_v0 }
  0x28   :  { %369 = vmatpush1.bf16.msra.mxu1 %v368_v27 }
  0x29   :  { %370 = vmatprep.subr.bf16.mxu1 %v414_v3 }
  0x2c   :  { %372 = vmatpush1.bf16.msra.mxu1 %v371_v30 }
  0x2d   :  { %373 = vmatprep.subr.bf16.mxu1 %v414_v3 }
  0x30   :  { %375 = vmatpush1.bf16.msra.mxu1 %v374_v33 }
  0x31   :  { %376 = vmatprep.subr.bf16.mxu1 %v414_v3 }
  0x34   :  { %378 = vmatpush1.bf16.msra.mxu1 %v377_v36 }
  0x35   :  { %379 = vmatprep.subr.bf16.mxu1 %v414_v3 }
  0x38   :  { %381 = vmatpush1.bf16.msra.mxu1 %v380_v39 }
  0x39   :  { %382 = vmatprep.subr.bf16.mxu1 %v414_v3 }
  0x3c   :  { %384 = vmatpush1.bf16.msra.mxu1 %v383_v42 }
  0x3d   :  { %244 = vmatprep.subr.mxu1 %v416_v43 }
  0x40   :  { %271 = vmatpush1.msk.msra.mxu1 %vm110_vm1, %v78_v44 }
  0x41   :  { %249 = vmatmul.mubr.f32.vlgmr.msra.gmra.mrb[0].mxu1 %v567_v6 }
  0xf9   :  { %v305_v45 = vpop.f32.mrb[0].mxu0 }
  0xfa   :  { %v306_v46 = vpop.f32.mrb[1].mxu0 }
  0xfb   :  { %v307_v47 = vadd.f32 %v306_v46, %v305_v45 }
  0xfd   :  { %v181_v49 = vadd.f32 %v307_v47, %v270_v48 }
 0x114   :  { %v250_v3 = vpop.f32.mrb[0].mxu1 }
 0x115   :  { %v251_v50 = vadd.f32 %v250_v3, %v181_v49  ;;  %v252_v51 = vpop.f32.mrb[1].mxu1 }
 0x117   :  { %255 = vst.msk [vmem:[#allocation2] sm:$0x3] %vm254_vm2, %v251_v50 }
 0x118   :  { %401 = shalt.err (!%p398_p4)
}
 0x119   :  { %s402_s2 = scalar_lea.hbm %s668_s3, 32 }
 0x11a   :  { %p403_p5 = scmp.ne.s32.totalorder %s668_s3, %s402_s2  ;;  %p406_p6 = scmp.lt.u32.totalorder %s402_s2, %s668_s3 }
 0x11c   :  { %p408_p7 = pnand %p406_p6, %p403_p5 }
 0x11e   :  { %411 = shalt.err (!%p408_p7)
}
 0x11f   :  { %265 = dma.vmem_to_hbm [thread:$0]  %s263_s6, 32, %s668_s3, [#allocation3]  }
 0x120   :  { %412 = dma.done.wait [#allocation3], 32  }
 0x121   :  { %413 = vsyncadd [#allocation3], 4294967264 }
 0x122   :  { %269 = vsyncpa [#allocation3], 1 }

</bundles_post_ra>
